<compile_context>
chip_gen: v6e
topology: v6e:2x2x1
jax: 0.10.0
libtpu: 0.0.40
codegen_flags: <defaults>
</compile_context>

<pallas_src>
import jax
import jax.numpy as jnp
from jax.experimental import pallas as pl
from jax.experimental.pallas import tpu as pltpu

K = 3       # kernel_size
PAD = 1     # padding
EPS = 1e-5  # BatchNorm1d eps


def _make_kernel(N, C, L, pack_taps):
    inv_cnt = 1.0 / float(N * L)

    def kernel(x_ref, w1_ref, w2_ref, gb_ref, alpha_ref, o_ref):
        # x_ref / o_ref : (N, C, L) f32   -- native PyTorch layout (C sublanes, L lanes)
        # w1_ref/w2_ref : (C, 3C) f32 if pack_taps else (K, C, C) f32
        # gb_ref        : (2, C, 1) f32   [gamma, beta]
        # alpha_ref     : (1,) f32 SMEM   PReLU slope
        alpha = alpha_ref[0]
        gamma = gb_ref[0]                       # (C, 1)
        beta = gb_ref[1]                        # (C, 1)

        # In-kernel lane index replaces the old int32 `ll` input slab.
        lane = jax.lax.broadcasted_iota(jnp.int32, (C, L), 1)
        left_ok = lane >= 1                     # position l has a valid l-1 neighbour
        right_ok = lane < (L - 1)               # position l has a valid l+1 neighbour

        if pack_taps:
            w1 = w1_ref[...]
            w2 = w2_ref[...]
        else:
            w1 = (w1_ref[0], w1_ref[1], w1_ref[2])
            w2 = (w2_ref[0], w2_ref[1], w2_ref[2])

        def conv(a, w):
            # a: (C, L).  k=3 'same' conv: temporal shifts are intra-tile XLU rolls
            # (L-1 == -1 mod L) with boundary masks; channel mixing on the MXU.
            lft = jnp.where(left_ok, pltpu.roll(a, shift=1, axis=1), 0.0)       # a[l-1]
            rgt = jnp.where(right_ok, pltpu.roll(a, shift=L - 1, axis=1), 0.0)  # a[l+1]
            if pack_taps:
                stk = jnp.concatenate([lft, a, rgt], axis=0)                    # (3C, L)
                return jnp.dot(w, stk, preferred_element_type=jnp.float32)
            y = jnp.dot(w[0], lft, preferred_element_type=jnp.float32)
            y = y + jnp.dot(w[1], a, preferred_element_type=jnp.float32)
            return y + jnp.dot(w[2], rgt, preferred_element_type=jnp.float32)

        def bn_scale_shift(ys):
            # One-pass training-mode BatchNorm1d stats over (N, L) per channel (biased
            # variance); lane reductions go to the XLU, which has slack.
            s = jnp.zeros((C, 1), jnp.float32)
            sq = jnp.zeros((C, 1), jnp.float32)
            for y in ys:
                s = s + jnp.sum(y, axis=1, keepdims=True)
                sq = sq + jnp.sum(y * y, axis=1, keepdims=True)
            mean = s * inv_cnt
            var = jnp.maximum(sq * inv_cnt - mean * mean, 0.0)
            scale = gamma * jax.lax.rsqrt(var + EPS)      # (C, 1)
            shift = beta - mean * scale                   # conv bias cancels exactly here
            return scale, shift

        def prelu(t):
            return jnp.where(t > 0, t, alpha * t)

        xs = [x_ref[n] for n in range(N)]                 # per-sample (C, L) views

        # conv1 -> BN(batch stats) -> PReLU
        y1 = [conv(xs[n], w1) for n in range(N)]
        sc1, sh1 = bn_scale_shift(y1)
        h = [prelu(sc1 * y1[n] + sh1) for n in range(N)]

        # conv2 -> BN(batch stats) -> +residual -> PReLU
        y2 = [conv(h[n], w2) for n in range(N)]
        sc2, sh2 = bn_scale_shift(y2)
        for n in range(N):
            o_ref[n] = prelu(sc2 * y2[n] + sh2 + xs[n])

    return kernel


@jax.jit
def resnet_block1d(x, w1, b1, w2, b2, gamma, beta, alpha):
    """x: (N, C, L) float32 (PyTorch NCL). Returns (N, C, L) float32."""
    N, C, L = x.shape
    pack_taps = C < 128        # pack the 3 taps into one MXU contraction when C is small

    def prep_w(w):
        w = w.astype(jnp.float32)                                    # (C_out, C_in, K)
        if pack_taps:
            # (C_out, 3*C_in): [tap0 | tap1 | tap2] along the contraction axis.
            return jnp.concatenate([w[:, :, 0], w[:, :, 1], w[:, :, 2]], axis=1)
        return jnp.transpose(w, (2, 0, 1))                           # (K, C_out, C_in)

    # Conv biases shift each channel's batch mean by exactly b and leave the variance
    # unchanged, so under training-mode BatchNorm they cancel out of the output exactly
    # and are never shipped to the kernel.
    del b1, b2

    w1p = prep_w(w1)
    w2p = prep_w(w2)
    gb = jnp.stack([gamma, beta], axis=0).astype(jnp.float32).reshape(2, C, 1)
    alpha_arr = jnp.reshape(jnp.asarray(alpha, jnp.float32), (1,))

    vmem = pl.BlockSpec(memory_space=pltpu.MemorySpace.VMEM)
    smem = pl.BlockSpec(memory_space=pltpu.MemorySpace.SMEM)

    cost = pl.CostEstimate(
        flops=2 * 2 * K * C * C * N * L + 24 * N * C * L,
        transcendentals=2 * C,
        bytes_accessed=4 * (2 * N * C * L + 2 * K * C * C + 2 * C + 1),
    )

    return pl.pallas_call(
        _make_kernel(N, C, L, pack_taps),
        out_shape=jax.ShapeDtypeStruct((N, C, L), jnp.float32),
        in_specs=[vmem, vmem, vmem, vmem, smem],
        out_specs=vmem,
        compiler_params=pltpu.CompilerParams(vmem_limit_bytes=32 * 1024 * 1024),
        cost_estimate=cost,
    )(x.astype(jnp.float32), w1p, w2p, gb, alpha_arr)


def reference_forward(x, w1, b1, w2, b2, gamma, beta, alpha):
    """Pure-JAX reference mirroring the PyTorch forward (training-mode BN, PReLU)."""
    def conv(a, w, b):
        y = jax.lax.conv_general_dilated(
            a, w, window_strides=(1,), padding=[(PAD, PAD)],
            dimension_numbers=('NCH', 'OIH', 'NCH'))
        return y + b[None, :, None]

    def bn(a):
        mean = jnp.mean(a, axis=(0, 2), keepdims=True)
        var = jnp.mean((a - mean) ** 2, axis=(0, 2), keepdims=True)
        return (a - mean) / jnp.sqrt(var + EPS) * gamma[None, :, None] + beta[None, :, None]

    def prelu(a):
        return jnp.where(a > 0, a, alpha * a)

    out = prelu(bn(conv(x, w1, b1)))
    out = bn(conv(out, w2, b2))
    return prelu(out + x)


if __name__ == "__main__":
    N, C, L = 2, 8, 128   # batch, num_filter, sequence length (lane-dense L)

    key = jax.random.PRNGKey(0)
    k_w1, k_b1, k_w2, k_b2, k_x = jax.random.split(key, 5)

    # Deterministic, PyTorch-Conv1d-style uniform init (bound = 1/sqrt(fan_in)).
    fan_in = C * K
    bound = 1.0 / (fan_in ** 0.5)
    w1 = jax.random.uniform(k_w1, (C, C, K), jnp.float32, -bound, bound)  # (C_out, C_in, K)
    b1 = jax.random.uniform(k_b1, (C,), jnp.float32, -bound, bound)
    w2 = jax.random.uniform(k_w2, (C, C, K), jnp.float32, -bound, bound)
    b2 = jax.random.uniform(k_b2, (C,), jnp.float32, -bound, bound)
    gamma = jnp.ones((C,), jnp.float32)   # BatchNorm1d weight (default init)
    beta = jnp.zeros((C,), jnp.float32)   # BatchNorm1d bias (default init)
    alpha = jnp.float32(0.25)             # PReLU default slope

    x = jax.random.normal(k_x, (N, C, L), jnp.float32)

    out = resnet_block1d(x, w1, b1, w2, b2, gamma, beta, alpha)
    out = jax.block_until_ready(out)

    ref = reference_forward(x, w1, b1, w2, b2, gamma, beta, alpha)
    assert out.shape == x.shape
    max_err = float(jnp.max(jnp.abs(out - ref)))
    assert jnp.allclose(out, ref, atol=1e-4, rtol=1e-4), f"max abs err = {max_err}"

    print("KERNEL_OK")
</pallas_src>

<mosaic_0001>
module attributes {stable_mosaic.version = 11 : i64} {
  func.func @kernel(%arg0: memref<2x8x128xf32, #tpu.memory_space<vmem>>, %arg1: memref<8x24xf32, #tpu.memory_space<vmem>>, %arg2: memref<8x24xf32, #tpu.memory_space<vmem>>, %arg3: memref<2x8x1xf32, #tpu.memory_space<vmem>>, %arg4: memref<1xf32, #tpu.memory_space<smem>>, %arg5: memref<2x8x128xf32, #tpu.memory_space<vmem>>) attributes {dimension_semantics = [], scalar_prefetch = 0 : i64, scratch_operands = 0 : i64, tpu.core_type = #tpu.core_type<tc>} {
    %c0 = arith.constant 0 : index
    %0 = memref.load %arg4[%c0] : memref<1xf32, #tpu.memory_space<smem>>
    %c0_0 = arith.constant 0 : index
    %c0_1 = arith.constant 0 : index
    %c0_2 = arith.constant 0 : index
    %1 = vector.load %arg3[%c0_0, %c0_1, %c0_2] : memref<2x8x1xf32, #tpu.memory_space<vmem>>, vector<1x8x1xf32>
    %2 = vector.shape_cast %1 : vector<1x8x1xf32> to vector<8x1xf32>
    %c1 = arith.constant 1 : index
    %c0_3 = arith.constant 0 : index
    %c0_4 = arith.constant 0 : index
    %3 = vector.load %arg3[%c1, %c0_3, %c0_4] : memref<2x8x1xf32, #tpu.memory_space<vmem>>, vector<1x8x1xf32>
    %4 = vector.shape_cast %3 : vector<1x8x1xf32> to vector<8x1xf32>
    %5 = tpu.iota {dimensions = array<i32: 1>} : vector<8x128xi32>
    %c1_i32 = arith.constant 1 : i32
    %6 = vector.broadcast %c1_i32 : i32 to vector<8x128xi32>
    %7 = arith.cmpi sge, %5, %6 : vector<8x128xi32>
    %c127_i32 = arith.constant 127 : i32
    %8 = vector.broadcast %c127_i32 : i32 to vector<8x128xi32>
    %9 = arith.cmpi slt, %5, %8 : vector<8x128xi32>
    %c0_5 = arith.constant 0 : index
    %c0_6 = arith.constant 0 : index
    %10 = vector.load %arg1[%c0_5, %c0_6] : memref<8x24xf32, #tpu.memory_space<vmem>>, vector<8x24xf32>
    %c0_7 = arith.constant 0 : index
    %c0_8 = arith.constant 0 : index
    %11 = vector.load %arg2[%c0_7, %c0_8] : memref<8x24xf32, #tpu.memory_space<vmem>>, vector<8x24xf32>
    %c0_9 = arith.constant 0 : index
    %c0_10 = arith.constant 0 : index
    %c0_11 = arith.constant 0 : index
    %12 = vector.load %arg0[%c0_9, %c0_10, %c0_11] : memref<2x8x128xf32, #tpu.memory_space<vmem>>, vector<1x8x128xf32>
    %13 = vector.shape_cast %12 : vector<1x8x128xf32> to vector<8x128xf32>
    %c1_12 = arith.constant 1 : index
    %c0_13 = arith.constant 0 : index
    %c0_14 = arith.constant 0 : index
    %14 = vector.load %arg0[%c1_12, %c0_13, %c0_14] : memref<2x8x128xf32, #tpu.memory_space<vmem>>, vector<1x8x128xf32>
    %15 = vector.shape_cast %14 : vector<1x8x128xf32> to vector<8x128xf32>
    %c1_i32_15 = arith.constant 1 : i32
    %16 = tpu.dynamic_rotate %13 by %c1_i32_15 dim 1 : vector<8x128xf32>, i32 -> vector<8x128xf32>
    %cst = arith.constant 0.000000e+00 : f32
    %17 = vector.broadcast %cst : f32 to vector<8x128xf32>
    %18 = arith.select %7, %16, %17 : vector<8x128xi1>, vector<8x128xf32>
    %c127_i32_16 = arith.constant 127 : i32
    %19 = tpu.dynamic_rotate %13 by %c127_i32_16 dim 1 : vector<8x128xf32>, i32 -> vector<8x128xf32>
    %cst_17 = arith.constant 0.000000e+00 : f32
    %20 = vector.broadcast %cst_17 : f32 to vector<8x128xf32>
    %21 = arith.select %9, %19, %20 : vector<8x128xi1>, vector<8x128xf32>
    %22 = tpu.concatenate %18, %13, %21 in 0 : vector<8x128xf32>, vector<8x128xf32>, vector<8x128xf32> -> vector<24x128xf32>
    %cst_18 = arith.constant dense<0.000000e+00> : vector<8x128xf32>
    %23 = tpu.matmul %10, %22, %cst_18 {dimension_numbers = #tpu.dot_dimension_numbers<[1], [0], [0], [1], [0, 0, 1, 1], [], []>} : vector<8x24xf32>, vector<24x128xf32>, vector<8x128xf32> -> vector<8x128xf32>
    %c1_i32_19 = arith.constant 1 : i32
    %24 = tpu.dynamic_rotate %15 by %c1_i32_19 dim 1 : vector<8x128xf32>, i32 -> vector<8x128xf32>
    %cst_20 = arith.constant 0.000000e+00 : f32
    %25 = vector.broadcast %cst_20 : f32 to vector<8x128xf32>
    %26 = arith.select %7, %24, %25 : vector<8x128xi1>, vector<8x128xf32>
    %c127_i32_21 = arith.constant 127 : i32
    %27 = tpu.dynamic_rotate %15 by %c127_i32_21 dim 1 : vector<8x128xf32>, i32 -> vector<8x128xf32>
    %cst_22 = arith.constant 0.000000e+00 : f32
    %28 = vector.broadcast %cst_22 : f32 to vector<8x128xf32>
    %29 = arith.select %9, %27, %28 : vector<8x128xi1>, vector<8x128xf32>
    %30 = tpu.concatenate %26, %15, %29 in 0 : vector<8x128xf32>, vector<8x128xf32>, vector<8x128xf32> -> vector<24x128xf32>
    %cst_23 = arith.constant dense<0.000000e+00> : vector<8x128xf32>
    %31 = tpu.matmul %10, %30, %cst_23 {dimension_numbers = #tpu.dot_dimension_numbers<[1], [0], [0], [1], [0, 0, 1, 1], [], []>} : vector<8x24xf32>, vector<24x128xf32>, vector<8x128xf32> -> vector<8x128xf32>
    %cst_24 = arith.constant 0.000000e+00 : f32
    %32 = vector.broadcast %cst_24 : f32 to vector<8x1xf32>
    %cst_25 = arith.constant 0.000000e+00 : f32
    %33 = vector.broadcast %cst_25 : f32 to vector<8x1xf32>
    %cst_26 = arith.constant dense<0.000000e+00> : vector<8xf32>
    %34 = vector.multi_reduction <add>, %23, %cst_26 [1] : vector<8x128xf32> to vector<8xf32>
    %35 = vector.shape_cast %34 : vector<8xf32> to vector<8x1xf32>
    %36 = arith.addf %32, %35 : vector<8x1xf32>
    %37 = arith.mulf %23, %23 : vector<8x128xf32>
    %cst_27 = arith.constant dense<0.000000e+00> : vector<8xf32>
    %38 = vector.multi_reduction <add>, %37, %cst_27 [1] : vector<8x128xf32> to vector<8xf32>
    %39 = vector.shape_cast %38 : vector<8xf32> to vector<8x1xf32>
    %40 = arith.addf %33, %39 : vector<8x1xf32>
    %cst_28 = arith.constant dense<0.000000e+00> : vector<8xf32>
    %41 = vector.multi_reduction <add>, %31, %cst_28 [1] : vector<8x128xf32> to vector<8xf32>
    %42 = vector.shape_cast %41 : vector<8xf32> to vector<8x1xf32>
    %43 = arith.addf %36, %42 : vector<8x1xf32>
    %44 = arith.mulf %31, %31 : vector<8x128xf32>
    %cst_29 = arith.constant dense<0.000000e+00> : vector<8xf32>
    %45 = vector.multi_reduction <add>, %44, %cst_29 [1] : vector<8x128xf32> to vector<8xf32>
    %46 = vector.shape_cast %45 : vector<8xf32> to vector<8x1xf32>
    %47 = arith.addf %40, %46 : vector<8x1xf32>
    %cst_30 = arith.constant 3.906250e-03 : f32
    %48 = vector.broadcast %cst_30 : f32 to vector<8x1xf32>
    %49 = arith.mulf %43, %48 : vector<8x1xf32>
    %cst_31 = arith.constant 3.906250e-03 : f32
    %50 = vector.broadcast %cst_31 : f32 to vector<8x1xf32>
    %51 = arith.mulf %47, %50 : vector<8x1xf32>
    %52 = arith.mulf %49, %49 : vector<8x1xf32>
    %53 = arith.subf %51, %52 : vector<8x1xf32>
    %cst_32 = arith.constant 0.000000e+00 : f32
    %54 = vector.broadcast %cst_32 : f32 to vector<8x1xf32>
    %55 = arith.maximumf %53, %54 : vector<8x1xf32>
    %cst_33 = arith.constant 9.99999974E-6 : f32
    %56 = vector.broadcast %cst_33 : f32 to vector<8x1xf32>
    %57 = arith.addf %55, %56 : vector<8x1xf32>
    %58 = math.rsqrt %57 : vector<8x1xf32>
    %59 = arith.mulf %2, %58 : vector<8x1xf32>
    %60 = arith.mulf %49, %59 : vector<8x1xf32>
    %61 = arith.subf %4, %60 : vector<8x1xf32>
    %62 = vector.broadcast %59 : vector<8x1xf32> to vector<8x128xf32>
    %63 = arith.mulf %62, %23 : vector<8x128xf32>
    %64 = vector.broadcast %61 : vector<8x1xf32> to vector<8x128xf32>
    %65 = arith.addf %63, %64 : vector<8x128xf32>
    %cst_34 = arith.constant 0.000000e+00 : f32
    %66 = vector.broadcast %cst_34 : f32 to vector<8x128xf32>
    %67 = arith.cmpf ogt, %65, %66 : vector<8x128xf32>
    %68 = vector.broadcast %0 : f32 to vector<8x128xf32>
    %69 = arith.mulf %68, %65 : vector<8x128xf32>
    %70 = arith.select %67, %65, %69 : vector<8x128xi1>, vector<8x128xf32>
    %71 = vector.broadcast %59 : vector<8x1xf32> to vector<8x128xf32>
    %72 = arith.mulf %71, %31 : vector<8x128xf32>
    %73 = vector.broadcast %61 : vector<8x1xf32> to vector<8x128xf32>
    %74 = arith.addf %72, %73 : vector<8x128xf32>
    %cst_35 = arith.constant 0.000000e+00 : f32
    %75 = vector.broadcast %cst_35 : f32 to vector<8x128xf32>
    %76 = arith.cmpf ogt, %74, %75 : vector<8x128xf32>
    %77 = vector.broadcast %0 : f32 to vector<8x128xf32>
    %78 = arith.mulf %77, %74 : vector<8x128xf32>
    %79 = arith.select %76, %74, %78 : vector<8x128xi1>, vector<8x128xf32>
    %c1_i32_36 = arith.constant 1 : i32
    %80 = tpu.dynamic_rotate %70 by %c1_i32_36 dim 1 : vector<8x128xf32>, i32 -> vector<8x128xf32>
    %cst_37 = arith.constant 0.000000e+00 : f32
    %81 = vector.broadcast %cst_37 : f32 to vector<8x128xf32>
    %82 = arith.select %7, %80, %81 : vector<8x128xi1>, vector<8x128xf32>
    %c127_i32_38 = arith.constant 127 : i32
    %83 = tpu.dynamic_rotate %70 by %c127_i32_38 dim 1 : vector<8x128xf32>, i32 -> vector<8x128xf32>
    %cst_39 = arith.constant 0.000000e+00 : f32
    %84 = vector.broadcast %cst_39 : f32 to vector<8x128xf32>
    %85 = arith.select %9, %83, %84 : vector<8x128xi1>, vector<8x128xf32>
    %86 = tpu.concatenate %82, %70, %85 in 0 : vector<8x128xf32>, vector<8x128xf32>, vector<8x128xf32> -> vector<24x128xf32>
    %cst_40 = arith.constant dense<0.000000e+00> : vector<8x128xf32>
    %87 = tpu.matmul %11, %86, %cst_40 {dimension_numbers = #tpu.dot_dimension_numbers<[1], [0], [0], [1], [0, 0, 1, 1], [], []>} : vector<8x24xf32>, vector<24x128xf32>, vector<8x128xf32> -> vector<8x128xf32>
    %c1_i32_41 = arith.constant 1 : i32
    %88 = tpu.dynamic_rotate %79 by %c1_i32_41 dim 1 : vector<8x128xf32>, i32 -> vector<8x128xf32>
    %cst_42 = arith.constant 0.000000e+00 : f32
    %89 = vector.broadcast %cst_42 : f32 to vector<8x128xf32>
    %90 = arith.select %7, %88, %89 : vector<8x128xi1>, vector<8x128xf32>
    %c127_i32_43 = arith.constant 127 : i32
    %91 = tpu.dynamic_rotate %79 by %c127_i32_43 dim 1 : vector<8x128xf32>, i32 -> vector<8x128xf32>
    %cst_44 = arith.constant 0.000000e+00 : f32
    %92 = vector.broadcast %cst_44 : f32 to vector<8x128xf32>
    %93 = arith.select %9, %91, %92 : vector<8x128xi1>, vector<8x128xf32>
    %94 = tpu.concatenate %90, %79, %93 in 0 : vector<8x128xf32>, vector<8x128xf32>, vector<8x128xf32> -> vector<24x128xf32>
    %cst_45 = arith.constant dense<0.000000e+00> : vector<8x128xf32>
    %95 = tpu.matmul %11, %94, %cst_45 {dimension_numbers = #tpu.dot_dimension_numbers<[1], [0], [0], [1], [0, 0, 1, 1], [], []>} : vector<8x24xf32>, vector<24x128xf32>, vector<8x128xf32> -> vector<8x128xf32>
    %cst_46 = arith.constant 0.000000e+00 : f32
    %96 = vector.broadcast %cst_46 : f32 to vector<8x1xf32>
    %cst_47 = arith.constant 0.000000e+00 : f32
    %97 = vector.broadcast %cst_47 : f32 to vector<8x1xf32>
    %cst_48 = arith.constant dense<0.000000e+00> : vector<8xf32>
    %98 = vector.multi_reduction <add>, %87, %cst_48 [1] : vector<8x128xf32> to vector<8xf32>
    %99 = vector.shape_cast %98 : vector<8xf32> to vector<8x1xf32>
    %100 = arith.addf %96, %99 : vector<8x1xf32>
    %101 = arith.mulf %87, %87 : vector<8x128xf32>
    %cst_49 = arith.constant dense<0.000000e+00> : vector<8xf32>
    %102 = vector.multi_reduction <add>, %101, %cst_49 [1] : vector<8x128xf32> to vector<8xf32>
    %103 = vector.shape_cast %102 : vector<8xf32> to vector<8x1xf32>
    %104 = arith.addf %97, %103 : vector<8x1xf32>
    %cst_50 = arith.constant dense<0.000000e+00> : vector<8xf32>
    %105 = vector.multi_reduction <add>, %95, %cst_50 [1] : vector<8x128xf32> to vector<8xf32>
    %106 = vector.shape_cast %105 : vector<8xf32> to vector<8x1xf32>
    %107 = arith.addf %100, %106 : vector<8x1xf32>
    %108 = arith.mulf %95, %95 : vector<8x128xf32>
    %cst_51 = arith.constant dense<0.000000e+00> : vector<8xf32>
    %109 = vector.multi_reduction <add>, %108, %cst_51 [1] : vector<8x128xf32> to vector<8xf32>
    %110 = vector.shape_cast %109 : vector<8xf32> to vector<8x1xf32>
    %111 = arith.addf %104, %110 : vector<8x1xf32>
    %cst_52 = arith.constant 3.906250e-03 : f32
    %112 = vector.broadcast %cst_52 : f32 to vector<8x1xf32>
    %113 = arith.mulf %107, %112 : vector<8x1xf32>
    %cst_53 = arith.constant 3.906250e-03 : f32
    %114 = vector.broadcast %cst_53 : f32 to vector<8x1xf32>
    %115 = arith.mulf %111, %114 : vector<8x1xf32>
    %116 = arith.mulf %113, %113 : vector<8x1xf32>
    %117 = arith.subf %115, %116 : vector<8x1xf32>
    %cst_54 = arith.constant 0.000000e+00 : f32
    %118 = vector.broadcast %cst_54 : f32 to vector<8x1xf32>
    %119 = arith.maximumf %117, %118 : vector<8x1xf32>
    %cst_55 = arith.constant 9.99999974E-6 : f32
    %120 = vector.broadcast %cst_55 : f32 to vector<8x1xf32>
    %121 = arith.addf %119, %120 : vector<8x1xf32>
    %122 = math.rsqrt %121 : vector<8x1xf32>
    %123 = arith.mulf %2, %122 : vector<8x1xf32>
    %124 = arith.mulf %113, %123 : vector<8x1xf32>
    %125 = arith.subf %4, %124 : vector<8x1xf32>
    %126 = vector.broadcast %123 : vector<8x1xf32> to vector<8x128xf32>
    %127 = arith.mulf %126, %87 : vector<8x128xf32>
    %128 = vector.broadcast %125 : vector<8x1xf32> to vector<8x128xf32>
    %129 = arith.addf %127, %128 : vector<8x128xf32>
    %130 = arith.addf %129, %13 : vector<8x128xf32>
    %cst_56 = arith.constant 0.000000e+00 : f32
    %131 = vector.broadcast %cst_56 : f32 to vector<8x128xf32>
    %132 = arith.cmpf ogt, %130, %131 : vector<8x128xf32>
    %133 = vector.broadcast %0 : f32 to vector<8x128xf32>
    %134 = arith.mulf %133, %130 : vector<8x128xf32>
    %135 = arith.select %132, %130, %134 : vector<8x128xi1>, vector<8x128xf32>
    %c0_57 = arith.constant 0 : index
    %c0_58 = arith.constant 0 : index
    %c0_59 = arith.constant 0 : index
    %136 = vector.load %arg5[%c0_57, %c0_58, %c0_59] : memref<2x8x128xf32, #tpu.memory_space<vmem>>, vector<1x8x128xf32>
    %137 = vector.shape_cast %136 : vector<1x8x128xf32> to vector<8x128xf32>
    %138 = vector.shape_cast %135 : vector<8x128xf32> to vector<1x8x128xf32>
    tpu.vector_store %arg5[%c0_57, %c0_58, %c0_59], %138 {strides = array<i32>} : memref<2x8x128xf32, #tpu.memory_space<vmem>>, vector<1x8x128xf32>,
    %139 = vector.broadcast %123 : vector<8x1xf32> to vector<8x128xf32>
    %140 = arith.mulf %139, %95 : vector<8x128xf32>
    %141 = vector.broadcast %125 : vector<8x1xf32> to vector<8x128xf32>
    %142 = arith.addf %140, %141 : vector<8x128xf32>
    %143 = arith.addf %142, %15 : vector<8x128xf32>
    %cst_60 = arith.constant 0.000000e+00 : f32
    %144 = vector.broadcast %cst_60 : f32 to vector<8x128xf32>
    %145 = arith.cmpf ogt, %143, %144 : vector<8x128xf32>
    %146 = vector.broadcast %0 : f32 to vector<8x128xf32>
    %147 = arith.mulf %146, %143 : vector<8x128xf32>
    %148 = arith.select %145, %143, %147 : vector<8x128xi1>, vector<8x128xf32>
    %c1_61 = arith.constant 1 : index
    %c0_62 = arith.constant 0 : index
    %c0_63 = arith.constant 0 : index
    %149 = vector.load %arg5[%c1_61, %c0_62, %c0_63] : memref<2x8x128xf32, #tpu.memory_space<vmem>>, vector<1x8x128xf32>
    %150 = vector.shape_cast %149 : vector<1x8x128xf32> to vector<8x128xf32>
    %151 = vector.shape_cast %148 : vector<8x128xf32> to vector<1x8x128xf32>
    tpu.vector_store %arg5[%c1_61, %c0_62, %c0_63], %151 {strides = array<i32>} : memref<2x8x128xf32, #tpu.memory_space<vmem>>, vector<1x8x128xf32>,
    return
  }
}

</mosaic_0001>

<bundles_post_ra>
// kernel: resnet_block1d.1
= control target key start
LH: loop header
LB: loop body
LE: loop exit
PB: predicated region body
PF: predicated region fallthrough
CT: control target
= control target key end

     0   :  { %s558_s20 = smov 127   ;;  %s559_s21 = smov 1   ;;  %s698_s0 = inlined_call_operand.vmem [shape: f32[2,8,128], index: 0, kind: input, shape index: {}]   ;;  %s699_s1 = inlined_call_operand.vmem [shape: f32[8,24], index: 1, kind: input, shape index: {}]   ;;  %s700_s2 = inlined_call_operand.vmem [shape: f32[8,24], index: 2, kind: input, shape index: {}]   ;;  %s701_s3 = inlined_call_operand.vmem [shape: f32[2,8,1], index: 3, kind: input, shape index: {}]   ;;  %s702_s4 = inlined_call_operand.<no memory space> [shape: f32[1], index: 4, kind: input, shape index: {}]   ;;  %s703_s5 = inlined_call_operand.hbm [shape: f32[2,8,128], index: 5, kind: output, shape index: {}]  }
   0x1   :  { %v599_v0 = vld [vmem:[%s698_s0] sm:$0xff] }
   0x2   :  { %38 = vrot.lane.b32.xlu0 %v599_v0, %s558_s20  ;;  %35 = vrot.lane.b32.xlu1 %v599_v0, %s559_s21 }
   0x3   :  { %11 = vsyncpa [#allocation4], 0  ;;  %v608_v1 = vld [vmem:[%s698_s0 + $0x8] sm:$0xff]  ;;  %v560_v2 = vmov 0.0   ;;  %vm561_vm0 = vmmov 0   ;;  %v26_v3 = vlaneseq  ;;  %v30_v7 = vld [vmem:[%s699_s1] sm:$0xff]  ;;  %v664_v39 = vstv %s702_s4 }
   0x4   :  { %486 = vmatprep.subr.mxu0 %v560_v2  ;;  %495 = vmatprep.subr.mxu1 %v560_v2  ;;  %vm41_vm3 = vcmask 195584   ;;  %v562_v16 = vmov 0   ;;  %v652_v29 = vld [vmem:[%s701_s3] sm:$0xff]  ;;  %v658_v32 = vld [vmem:[%s701_s3 + $0x8] sm:$0xff] }
   0x5   :  { %492 = vmatprep.mubr.msk.f32.mxu0 %vm561_vm0, %v560_v2  ;;  %501 = vmatprep.mubr.msk.f32.mxu1 %vm561_vm0, %v560_v2  ;;  %v620_v4 = vand.u32 127, %v26_v3  ;;  %v31_v48 = vld [vmem:[%s700_s2] sm:$0xff]  ;;  %s563_s2 = smov [#allocation3]  }
   0x6   :  { %118 = vrot.lane.b32.xlu0 %v608_v1, %s558_s20  ;;  %115 = vrot.lane.b32.xlu1 %v608_v1, %s559_s21  ;;  %s445_s30 = sshll.u32 %s563_s2, 4  ;;  %s446_s30 = int_to_ptr.vmem [resolvable:$true] %s445_s30 }
   0x7   :  { %vm29_vm1 = vcmp.lt.s32.totalorder %v620_v4, 127  ;;  %vm28_vm2 = vcmp.ge.s32.totalorder %v620_v4, 1  ;;  %530 = vset.pattern.permute.xlu1 %v562_v16  ;;  %531 = vset.pattern.permute.xlu0 %v562_v16  ;;  %s536_s6 = scalar_lea.vmem %s446_s30, 256  ;;  %p541_p1 = scmp.lt.s32.totalorder %s446_s30, %s446_s30 }
   0x8   :  { %p537_p0 = scmp.ne.s32.totalorder %s446_s30, %s536_s6  ;;  %p542_p2 = scmp.lt.s32.totalorder %s536_s6, %s536_s6 }
   0xa   :  { %p543_p3 = por %p542_p2, %p541_p1 }
   0xc   :  { %p544_p4 = pnand %p543_p3, %p537_p0 }
  0x74   :  { %v39_v5 = vpop.permute.xlu0 %38  ;;  %v36_v6 = vpop.permute.xlu1 %35 }
  0x75   :  { %487 = vmatpush3.msk.msra.mxu0 %vm29_vm1, %v39_v5 }
  0x76   :  { %488 = vmatprep.subr.mxu0 %v560_v2 }
  0x77   :  { %489 = vmatpush3.msra.mxu0 %v599_v0 }
  0x78   :  { %v119_v8 = vpop.permute.xlu0 %118  ;;  %490 = vmatprep.subr.mxu0 %v560_v2  ;;  %v116_v9 = vpop.permute.xlu1 %115 }
  0x79   :  { %491 = vmatpush3.msk.msra.mxu0 %vm28_vm2, %v36_v6  ;;  %496 = vmatpush3.msk.msra.mxu1 %vm29_vm1, %v119_v8 }
  0x7a   :  { %493 = vmatmul.mubr.msk.f32.vlgmr.msra.gmra.mxu0 %vm41_vm3, %v30_v7  ;;  %497 = vmatprep.subr.mxu1 %v560_v2 }
  0x7b   :  { %498 = vmatpush3.msra.mxu1 %v608_v1  ;;  %504 = vmatprep.subr.mxu0 %v560_v2 }
  0x7c   :  { %499 = vmatprep.subr.mxu1 %v560_v2  ;;  %510 = vmatprep.mubr.msk.f32.mxu0 %vm561_vm0, %v560_v2 }
  0x7d   :  { %500 = vmatpush3.msk.msra.mxu1 %vm28_vm2, %v116_v9 }
  0x7e   :  { %502 = vmatmul.mubr.msk.f32.vlgmr.msra.gmra.mxu1 %vm41_vm3, %v30_v7  ;;  %513 = vmatprep.subr.mxu1 %v560_v2 }
  0x7f   :  { %519 = vmatprep.mubr.msk.f32.mxu1 %vm561_vm0, %v560_v2 }
 0x13a   :  { %v111_v10 = vpop.f32.mrf.mxu0 }
 0x13b   :  { %191 = vadd.xlane.f32.xlu0 %v111_v10  ;;  %v194_v12 = vmul.f32 %v111_v10, %v111_v10 }
 0x13c   :  { %v494_v11 = vpop.f32.mrf.mxu0 }
 0x13e   :  { %v187_v13 = vpop.f32.mrf.mxu1 }
 0x13f   :  { %198 = vadd.xlane.f32.xlu1 %v187_v13  ;;  %195 = vadd.xlane.f32.xlu0 %v194_v12  ;;  %v201_v14 = vmul.f32 %v187_v13, %v187_v13 }
 0x140   :  { %v503_v15 = vpop.f32.mrf.mxu1 }
 0x143   :  { %202 = vadd.xlane.f32.xlu0 %v201_v14 }
 0x1c4   :  { %v192_v17 = vpop.xlane.xlu0 %191 }
 0x1c8   :  { %v199_v18 = vpop.xlane.xlu1 %198  ;;  %v196_v19 = vpop.xlane.xlu0 %195 }
 0x1c9   :  { %v200_v20 = vadd.f32 %v199_v18, %v192_v17 }
 0x1cb   :  { %v205_v21 = vmul.f32 0.00390625, %v200_v20 }
 0x1cc   :  { %v203_v22 = vpop.xlane.xlu0 %202 }
 0x1cd   :  { %v204_v23 = vadd.f32 %v203_v22, %v196_v19  ;;  %v207_v24 = vmul.f32 %v205_v21, %v205_v21 }
 0x1cf   :  { %v206_v25 = vmul.f32 0.00390625, %v204_v23 }
 0x1d1   :  { %v208_v26 = vsub.f32 %v206_v25, %v207_v24 }
 0x1d3   :  { %v209_v27 = vmax.f32 %v208_v26, 0.0 }
 0x1d5   :  { %v210_v28 = vadd.f32 1e-05, %v209_v27 }
 0x1d7   :  { %532 = vrsqrt.f32 %v210_v28 }
 0x1e4   :  { %v533_v30 = vpop.eup %532 }
 0x1e5   :  { %v212_v31 = vmul.f32 %v533_v30, %v652_v29 }
 0x1e7   :  { %217 = vperm.xlu1 %530, %v212_v31   ;;  %v213_v33 = vmul.f32 %v212_v31, %v205_v21 }
 0x1e9   :  { %v214_v34 = vsub.f32 %v658_v32, %v213_v33 }
 0x1eb   :  { %223 = vperm.xlu0 %531, %v214_v34  }
 0x262   :  { %v218_v35 = vpop.permute.xlu1 %217 }
 0x263   :  { %v220_v36 = vmul.f32 %v218_v35, %v111_v10  ;;  %v231_v37 = vmul.f32 %v218_v35, %v187_v13 }
 0x266   :  { %v224_v38 = vpop.permute.xlu0 %223 }
 0x267   :  { %v226_v40 = vadd.f32 %v224_v38, %v220_v36  ;;  %v232_v41 = vadd.f32 %v231_v37, %v224_v38 }
 0x269   :  { %vm227_vm4 = vcmp.gt.f32.partialorder %v226_v40, 0.0  ;;  %v229_v42 = vmul.f32 %v664_v39, %v226_v40  ;;  %v234_v44 = vmul.f32 %v232_v41, %v664_v39  ;;  %vm233_vm5 = vcmp.gt.f32.partialorder %v232_v41, 0.0 }
 0x26b   :  { %v230_v43 = vsel %vm227_vm4, %v226_v40, %v229_v42  ;;  %v235_v45 = vsel %vm233_vm5, %v232_v41, %v234_v44 }
 0x26c   :  { %239 = vrot.lane.b32.xlu1 %v230_v43, %s558_s20 }
 0x270   :  { %318 = vrot.lane.b32.xlu1 %v235_v45, %s558_s20 }
 0x274   :  { %236 = vrot.lane.b32.xlu1 %v230_v43, %s559_s21 }
 0x278   :  { %315 = vrot.lane.b32.xlu1 %v235_v45, %s559_s21 }
 0x2de   :  { %v240_v46 = vpop.permute.xlu1 %239 }
 0x2df   :  { %505 = vmatpush3.msk.msra.mxu0 %vm29_vm1, %v240_v46 }
 0x2e0   :  { %506 = vmatprep.subr.mxu0 %v560_v2 }
 0x2e1   :  { %507 = vmatpush3.msra.mxu0 %v230_v43 }
 0x2e2   :  { %v319_v47 = vpop.permute.xlu1 %318  ;;  %508 = vmatprep.subr.mxu0 %v560_v2 }
 0x2e3   :  { %514 = vmatpush3.msk.msra.mxu1 %vm29_vm1, %v319_v47 }
 0x2e4   :  { %515 = vmatprep.subr.mxu1 %v560_v2 }
 0x2e5   :  { %516 = vmatpush3.msra.mxu1 %v235_v45 }
 0x2e6   :  { %v237_v49 = vpop.permute.xlu1 %236  ;;  %517 = vmatprep.subr.mxu1 %v560_v2 }
 0x2e7   :  { %509 = vmatpush3.msk.msra.mxu0 %vm28_vm2, %v237_v49 }
 0x2e8   :  { %511 = vmatmul.mubr.msk.f32.vlgmr.msra.gmra.mxu0 %vm41_vm3, %v31_v48 }
 0x2ea   :  { %v316_v50 = vpop.permute.xlu1 %315 }
 0x2eb   :  { %518 = vmatpush3.msk.msra.mxu1 %vm28_vm2, %v316_v50 }
 0x2ec   :  { %520 = vmatmul.mubr.msk.f32.vlgmr.msra.gmra.mxu1 %vm41_vm3, %v31_v48 }
 0x3a8   :  { %v311_v51 = vpop.f32.mrf.mxu0 }
 0x3a9   :  { %391 = vadd.xlane.f32.xlu1 %v311_v51  ;;  %v394_v53 = vmul.f32 %v311_v51, %v311_v51 }
 0x3aa   :  { %v512_v52 = vpop.f32.mrf.mxu0 }
 0x3ac   :  { %v387_v54 = vpop.f32.mrf.mxu1 }
 0x3ad   :  { %395 = vadd.xlane.f32.xlu1 %v394_v53  ;;  %398 = vadd.xlane.f32.xlu0 %v387_v54  ;;  %v401_v55 = vmul.f32 %v387_v54, %v387_v54 }
 0x3ae   :  { %v521_v56 = vpop.f32.mrf.mxu1 }
 0x3b1   :  { %402 = vadd.xlane.f32.xlu1 %v401_v55 }
 0x432   :  { %v392_v57 = vpop.xlane.xlu1 %391 }
 0x436   :  { %v399_v58 = vpop.xlane.xlu0 %398  ;;  %v396_v59 = vpop.xlane.xlu1 %395 }
 0x437   :  { %v400_v60 = vadd.f32 %v399_v58, %v392_v57 }
 0x439   :  { %v405_v61 = vmul.f32 0.00390625, %v400_v60 }
 0x43a   :  { %v403_v62 = vpop.xlane.xlu1 %402 }
 0x43b   :  { %v404_v63 = vadd.f32 %v403_v62, %v396_v59  ;;  %v407_v2 = vmul.f32 %v405_v61, %v405_v61 }
 0x43d   :  { %v406_v3 = vmul.f32 0.00390625, %v404_v63 }
 0x43f   :  { %v408_v4 = vsub.f32 %v406_v3, %v407_v2 }
 0x441   :  { %v409_v5 = vmax.f32 %v408_v4, 0.0 }
 0x443   :  { %v410_v6 = vadd.f32 1e-05, %v409_v5 }
 0x445   :  { %534 = vrsqrt.f32 %v410_v6 }
 0x452   :  { %v535_v7 = vpop.eup %534 }
 0x453   :  { %v412_v8 = vmul.f32 %v535_v7, %v652_v29 }
 0x455   :  { %417 = vperm.xlu1 %530, %v412_v8   ;;  %v413_v9 = vmul.f32 %v412_v8, %v405_v61 }
 0x457   :  { %v414_v10 = vsub.f32 %v658_v32, %v413_v9 }
 0x459   :  { %423 = vperm.xlu0 %531, %v414_v10  }
 0x4d0   :  { %v418_v11 = vpop.permute.xlu1 %417 }
 0x4d1   :  { %v420_v12 = vmul.f32 %v418_v11, %v311_v51  ;;  %v432_v13 = vmul.f32 %v418_v11, %v387_v54 }
 0x4d4   :  { %v424_v14 = vpop.permute.xlu0 %423 }
 0x4d5   :  { %v426_v15 = vadd.f32 %v424_v14, %v420_v12  ;;  %v433_v16 = vadd.f32 %v432_v13, %v424_v14 }
 0x4d7   :  { %v427_v17 = vadd.f32 %v426_v15, %v599_v0  ;;  %v434_v18 = vadd.f32 %v608_v1, %v433_v16 }
 0x4d9   :  { %vm428_vm6 = vcmp.gt.f32.partialorder %v427_v17, 0.0  ;;  %v429_v19 = vmul.f32 %v427_v17, %v664_v39  ;;  %vm435_vm7 = vcmp.gt.f32.partialorder %v434_v18, 0.0  ;;  %v436_v20 = vmul.f32 %v434_v18, %v664_v39 }
 0x4db   :  { %v430_v21 = vsel %vm428_vm6, %v427_v17, %v429_v19  ;;  %v437_v22 = vsel %vm435_vm7, %v434_v18, %v436_v20 }
 0x4dc   :  { %431 = vst [vmem:[#allocation3] sm:$0xff] %v430_v21  ;;  %439 = vst [vmem:[#allocation3 + $0x8] sm:$0xff] %v437_v22 }
 0x4dd   :  { %547 = shalt.err (!%p544_p4)
}
 0x4de   :  { %s564_s7 = smov 128   ;;  %s565_s8 = smov 8  }
 0x4df   :  { %451 = dma.vmem_to_hbm [thread:$0]  %s446_s30, 256, %s703_s5, [#allocation4], %s564_s7, %s564_s7, %s565_s8  }
 0x4e0   :  { %556 = dma.done.wait [#allocation4], 256  }
 0x4e1   :  { %557 = vsyncadd [#allocation4], 4294967040 }
 0x4e2   :  { %455 = vsyncpa [#allocation4], 1 }

</bundles_post_ra>
